<compile_context>
chip_gen: v5e
topology: v5e:2x2
jax: 0.10.0
libtpu: 0.0.40
codegen_flags: <defaults>
</compile_context>

<pallas_src>
import math

import numpy as np
import jax
import jax.numpy as jnp
from jax.experimental import pallas as pl
from jax.experimental.pallas import tpu as pltpu


def residual_ratio(k):
    return 1.0 / (k + 1)


def _round_up(n, m):
    return ((n + m - 1) // m) * m


def _upsample_linear_matrix(length, scale):
    """Static operator U (scale*L, L) such that (U @ x) reproduces
    nn.Upsample(scale_factor=scale, mode='linear', align_corners=False)."""
    out_len = scale * length
    U = np.zeros((out_len, length), np.float32)
    for j in range(out_len):
        src = max((j + 0.5) / scale - 0.5, 0.0)
        lo = min(int(math.floor(src)), length - 1)
        frac = src - lo
        hi = min(lo + 1, length - 1)
        U[j, lo] += 1.0 - frac
        U[j, hi] += frac
    return U


# ---------------------------------------------------------------------------
# Pallas kernel (one batch element per grid step)
# ---------------------------------------------------------------------------
def _make_kernel(K, L_out, activation, res_ratio):
    sc_ratio = 1.0 - res_ratio

    def kernel(alpha_ref, zp_ref, xs_ref, wr_ref, wsc_ref, u_ref,
               br_ref, bsc_ref, o_ref):
        # ---- residual branch: ConvTranspose1d == K shifted MXU matmuls on the
        # zero-inserted / zero-padded input with tap-flipped weights -----------
        acc = jnp.dot(zp_ref[0, 0:L_out, :], wr_ref[0],
                      preferred_element_type=jnp.float32)
        for k in range(1, K):                       # K is small & static
            acc = acc + jnp.dot(zp_ref[0, k:k + L_out, :], wr_ref[k],
                                preferred_element_type=jnp.float32)
        res = acc + br_ref[...]                      # (L_out, Cop), f32

        if activation == 'relu':                     # nn.PReLU(), single alpha
            alpha = alpha_ref[0]
            res = jnp.where(res >= 0.0, res, alpha * res)
        else:                                        # nn.Tanh()
            res = jnp.tanh(res)

        # ---- shortcut branch: 1x1 conv (channel matmul) then the static
        # linear-upsample operator (identity matrix when stride == 1) ---------
        s = jnp.dot(xs_ref[0], wsc_ref[...],
                    preferred_element_type=jnp.float32)          # (L,  Cop)
        s = jnp.dot(u_ref[...], s,
                    preferred_element_type=jnp.float32)          # (L_out, Cop)
        s = s + bsc_ref[...]

        o_ref[0] = (res_ratio * res + sc_ratio * s).astype(o_ref.dtype)

    return kernel


# ---------------------------------------------------------------------------
# Wrapper: host-side layout / weight folding + pallas_call
# ---------------------------------------------------------------------------
def residual_block_transpose(x, params, *, kernel_size, stride, padding,
                             res_ratio, activation):
    """x: (B, C_in, L) -> (B, C_out, L_out).  params = (Wr, br, alpha, Wsc, bsc)."""
    Wr, br, alpha, Wsc, bsc = params
    B, Ci, L = x.shape
    Ci_w, Co, K = Wr.shape
    assert Ci_w == Ci and K == kernel_size
    L_out = (L - 1) * stride - 2 * padding + K
    # TODO(synk): output-cropping path for padding > kernel_size - 1 not implemented.
    assert padding <= K - 1

    Cip = _round_up(Ci, 128)       # lane-dense input channels
    Cop = _round_up(Co, 128)       # lane-dense output channels
    dt = x.dtype

    # channel-last + lane padding (layout only)
    x_cl = jnp.pad(jnp.transpose(x, (0, 2, 1)), ((0, 0), (0, 0), (0, Cip - Ci)))

    # residual-branch input: zero-insertion (stride) + (K-1-padding) zero pad
    if stride == 1:
        z = x_cl
    else:
        Lz = (L - 1) * stride + 1
        z = jnp.zeros((B, Lz, Cip), dt).at[:, ::stride, :].set(x_cl)
    pz = K - 1 - padding
    zp = jnp.pad(z, ((0, 0), (pz, pz), (0, 0)))
    Lp = zp.shape[1]
    assert Lp == L_out + K - 1

    # pre-folded weights: tap-flipped & pre-transposed -> no in-kernel `.T`
    wr = jnp.transpose(jnp.flip(Wr, axis=2), (2, 0, 1))           # (K, Ci, Co)
    wr = jnp.pad(wr, ((0, 0), (0, Cip - Ci), (0, Cop - Co)))
    wsc = jnp.pad(jnp.transpose(Wsc[:, :, 0], (1, 0)),
                  ((0, Cip - Ci), (0, Cop - Co)))                 # (Cip, Cop)
    br_p = jnp.pad(br, (0, Cop - Co)).reshape(1, Cop).astype(jnp.float32)
    bsc_p = jnp.pad(bsc, (0, Cop - Co)).reshape(1, Cop).astype(jnp.float32)

    # static upsample operator (identity when stride == 1)
    U_np = _upsample_linear_matrix(L, 2) if stride == 2 else np.eye(L, dtype=np.float32)
    assert U_np.shape[0] == L_out       # residual / shortcut lengths must agree
    U = jnp.asarray(U_np, jnp.float32)
    Ls = U.shape[1]

    alpha_arr = jnp.reshape(jnp.asarray(alpha, jnp.float32), (1,))

    kernel = _make_kernel(K, L_out, activation, float(res_ratio))

    out_p = pl.pallas_call(
        kernel,
        out_shape=jax.ShapeDtypeStruct((B, L_out, Cop), dt),
        grid=(B,),
        in_specs=[
            pl.BlockSpec(memory_space=pltpu.SMEM),                  # PReLU alpha
            pl.BlockSpec((1, Lp, Cip), lambda b: (b, 0, 0)),        # residual input
            pl.BlockSpec((1, L, Cip), lambda b: (b, 0, 0)),         # shortcut input
            pl.BlockSpec((K, Cip, Cop), lambda b: (0, 0, 0)),       # conv-T taps (resident)
            pl.BlockSpec((Cip, Cop), lambda b: (0, 0)),             # 1x1 conv weight (resident)
            pl.BlockSpec((L_out, Ls), lambda b: (0, 0)),            # upsample operator (resident)
            pl.BlockSpec((1, Cop), lambda b: (0, 0)),               # conv-T bias (resident)
            pl.BlockSpec((1, Cop), lambda b: (0, 0)),               # 1x1 conv bias (resident)
        ],
        out_specs=pl.BlockSpec((1, L_out, Cop), lambda b: (b, 0, 0)),
        compiler_params=pltpu.CompilerParams(
            dimension_semantics=("parallel",)),
    )(alpha_arr, zp, x_cl, wr, wsc, U, br_p, bsc_p)

    out = out_p[:, :, :Co]                      # drop channel lane padding
    return jnp.transpose(out, (0, 2, 1))        # back to (B, C_out, L_out)


# ---------------------------------------------------------------------------
# Pure-JAX reference (mirrors the PyTorch module)
# ---------------------------------------------------------------------------
def residual_block_transpose_ref(x, Wr, br, alpha, Wsc, bsc, *, stride, padding,
                                 res_ratio, activation):
    B, Ci, L = x.shape
    _, Co, K = Wr.shape
    L_out = (L - 1) * stride - 2 * padding + K

    res = jnp.zeros((B, Co, L_out), jnp.float32)
    for i in range(L):
        for k in range(K):
            t = i * stride - padding + k
            if 0 <= t < L_out:
                res = res.at[:, :, t].add(
                    jnp.einsum('bc,cd->bd', x[:, :, i], Wr[:, :, k]))
    res = res + br[None, :, None]
    if activation == 'relu':
        res = jnp.where(res >= 0, res, alpha * res)
    else:
        res = jnp.tanh(res)

    if stride == 2:
        j = jnp.arange(2 * L)
        src = jnp.maximum((j + 0.5) / 2.0 - 0.5, 0.0)
        lo = jnp.floor(src).astype(jnp.int32)
        frac = src - lo
        hi = jnp.minimum(lo + 1, L - 1)
        u = x[:, :, lo] * (1.0 - frac) + x[:, :, hi] * frac
    else:
        u = x
    sc = jnp.einsum('bcl,dc->bdl', u, Wsc[:, :, 0]) + bsc[None, :, None]
    return res_ratio * res + (1.0 - res_ratio) * sc


# ---------------------------------------------------------------------------
# Deterministic parameter construction
# ---------------------------------------------------------------------------
def init_params(key, in_channels, out_channels, kernel_size, activation):
    k1, k2, k3, k4 = jax.random.split(key, 4)
    bnd_t = 1.0 / math.sqrt(out_channels * kernel_size)
    Wr = jax.random.uniform(k1, (in_channels, out_channels, kernel_size),
                            jnp.float32, -bnd_t, bnd_t)
    br = jax.random.uniform(k2, (out_channels,), jnp.float32, -bnd_t, bnd_t)
    alpha = jnp.asarray(0.25, jnp.float32)          # nn.PReLU() default
    bnd_c = 1.0 / math.sqrt(in_channels)
    Wsc = jax.random.uniform(k3, (out_channels, in_channels, 1),
                             jnp.float32, -bnd_c, bnd_c)
    bsc = jax.random.uniform(k4, (out_channels,), jnp.float32, -bnd_c, bnd_c)
    return Wr, br, alpha, Wsc, bsc


if __name__ == "__main__":
    rr = residual_ratio(1)          # 0.5

    # Config 1: stride=2 upsampling block (PReLU activation)
    B, Ci, Co, K, stride, padding, L = 2, 4, 8, 4, 2, 1, 8
    kp, kx = jax.random.split(jax.random.PRNGKey(0))
    params = init_params(kp, Ci, Co, K, 'relu')
    x = jax.random.normal(kx, (B, Ci, L), jnp.float32)

    out = residual_block_transpose(x, params, kernel_size=K, stride=stride,
                                   padding=padding, res_ratio=rr,
                                   activation='relu')
    out = jax.block_until_ready(out)
    ref = residual_block_transpose_ref(x, *params, stride=stride,
                                       padding=padding, res_ratio=rr,
                                       activation='relu')
    assert out.shape == (B, Co, (L - 1) * stride - 2 * padding + K)
    assert jnp.allclose(out, ref, atol=1e-4, rtol=1e-4), \
        float(jnp.max(jnp.abs(out - ref)))

    # Config 2: stride=1 block (identity shortcut resample, Tanh activation)
    K2, stride2, padding2 = 3, 1, 1
    kp2, kx2 = jax.random.split(jax.random.PRNGKey(1))
    params2 = init_params(kp2, Ci, Co, K2, 'tanh')
    x2 = jax.random.normal(kx2, (B, Ci, L), jnp.float32)

    out2 = residual_block_transpose(x2, params2, kernel_size=K2, stride=stride2,
                                    padding=padding2, res_ratio=rr,
                                    activation='tanh')
    out2 = jax.block_until_ready(out2)
    ref2 = residual_block_transpose_ref(x2, *params2, stride=stride2,
                                        padding=padding2, res_ratio=rr,
                                        activation='tanh')
    assert out2.shape == (B, Co, L)
    assert jnp.allclose(out2, ref2, atol=1e-4, rtol=1e-4), \
        float(jnp.max(jnp.abs(out2 - ref2)))

    print("KERNEL_OK")
</pallas_src>

<mosaic_0001>
module attributes {stable_mosaic.version = 11 : i64} {
  func.func @kernel(%arg0: i32, %arg1: memref<1xf32, #tpu.memory_space<smem>>, %arg2: memref<1x19x128xf32, #tpu.memory_space<vmem>>, %arg3: memref<1x8x128xf32, #tpu.memory_space<vmem>>, %arg4: memref<4x128x128xf32, #tpu.memory_space<vmem>>, %arg5: memref<128x128xf32, #tpu.memory_space<vmem>>, %arg6: memref<16x8xf32, #tpu.memory_space<vmem>>, %arg7: memref<1x128xf32, #tpu.memory_space<vmem>>, %arg8: memref<1x128xf32, #tpu.memory_space<vmem>>, %arg9: memref<1x16x128xf32, #tpu.memory_space<vmem>>) attributes {dimension_semantics = [#tpu.dimension_semantics<parallel>], iteration_bounds = array<i64: 2>, scalar_prefetch = 0 : i64, scratch_operands = 0 : i64, tpu.core_type = #tpu.core_type<tc>, window_params = [{transform_indices = @transform_0, window_bounds = array<i64: 1>}, {transform_indices = @transform_1, window_bounds = array<i64: 1, 19, 128>}, {transform_indices = @transform_2, window_bounds = array<i64: 1, 8, 128>}, {pipeline_mode = #tpu.pipeline_mode<synchronous>, transform_indices = @transform_3, window_bounds = array<i64: 4, 128, 128>}, {pipeline_mode = #tpu.pipeline_mode<synchronous>, transform_indices = @transform_4, window_bounds = array<i64: 128, 128>}, {pipeline_mode = #tpu.pipeline_mode<synchronous>, transform_indices = @transform_5, window_bounds = array<i64: 16, 8>}, {pipeline_mode = #tpu.pipeline_mode<synchronous>, transform_indices = @transform_6, window_bounds = array<i64: 1, 128>}, {pipeline_mode = #tpu.pipeline_mode<synchronous>, transform_indices = @transform_7, window_bounds = array<i64: 1, 128>}, {transform_indices = @transform_8, window_bounds = array<i64: 1, 16, 128>}]} {
    %c0 = arith.constant 0 : index
    %c0_0 = arith.constant 0 : index
    %c0_1 = arith.constant 0 : index
    %0 = vector.load %arg2[%c0, %c0_0, %c0_1] : memref<1x19x128xf32, #tpu.memory_space<vmem>>, vector<1x16x128xf32>
    %1 = vector.shape_cast %0 : vector<1x16x128xf32> to vector<16x128xf32>
    %c0_2 = arith.constant 0 : index
    %c0_3 = arith.constant 0 : index
    %c0_4 = arith.constant 0 : index
    %2 = vector.load %arg4[%c0_2, %c0_3, %c0_4] : memref<4x128x128xf32, #tpu.memory_space<vmem>>, vector<1x128x128xf32>
    %3 = vector.shape_cast %2 : vector<1x128x128xf32> to vector<128x128xf32>
    %cst = arith.constant dense<0.000000e+00> : vector<16x128xf32>
    %4 = tpu.matmul %1, %3, %cst {dimension_numbers = #tpu.dot_dimension_numbers<[1], [0], [0], [1], [0, 0, 1, 1], [], []>} : vector<16x128xf32>, vector<128x128xf32>, vector<16x128xf32> -> vector<16x128xf32>
    %c0_5 = arith.constant 0 : index
    %c1 = arith.constant 1 : index
    %c0_6 = arith.constant 0 : index
    %5 = vector.load %arg2[%c0_5, %c1, %c0_6] : memref<1x19x128xf32, #tpu.memory_space<vmem>>, vector<1x16x128xf32>
    %6 = vector.shape_cast %5 : vector<1x16x128xf32> to vector<16x128xf32>
    %c1_7 = arith.constant 1 : index
    %c0_8 = arith.constant 0 : index
    %c0_9 = arith.constant 0 : index
    %7 = vector.load %arg4[%c1_7, %c0_8, %c0_9] : memref<4x128x128xf32, #tpu.memory_space<vmem>>, vector<1x128x128xf32>
    %8 = vector.shape_cast %7 : vector<1x128x128xf32> to vector<128x128xf32>
    %cst_10 = arith.constant dense<0.000000e+00> : vector<16x128xf32>
    %9 = tpu.matmul %6, %8, %cst_10 {dimension_numbers = #tpu.dot_dimension_numbers<[1], [0], [0], [1], [0, 0, 1, 1], [], []>} : vector<16x128xf32>, vector<128x128xf32>, vector<16x128xf32> -> vector<16x128xf32>
    %10 = arith.addf %4, %9 : vector<16x128xf32>
    %c0_11 = arith.constant 0 : index
    %c2 = arith.constant 2 : index
    %c0_12 = arith.constant 0 : index
    %11 = vector.load %arg2[%c0_11, %c2, %c0_12] : memref<1x19x128xf32, #tpu.memory_space<vmem>>, vector<1x16x128xf32>
    %12 = vector.shape_cast %11 : vector<1x16x128xf32> to vector<16x128xf32>
    %c2_13 = arith.constant 2 : index
    %c0_14 = arith.constant 0 : index
    %c0_15 = arith.constant 0 : index
    %13 = vector.load %arg4[%c2_13, %c0_14, %c0_15] : memref<4x128x128xf32, #tpu.memory_space<vmem>>, vector<1x128x128xf32>
    %14 = vector.shape_cast %13 : vector<1x128x128xf32> to vector<128x128xf32>
    %cst_16 = arith.constant dense<0.000000e+00> : vector<16x128xf32>
    %15 = tpu.matmul %12, %14, %cst_16 {dimension_numbers = #tpu.dot_dimension_numbers<[1], [0], [0], [1], [0, 0, 1, 1], [], []>} : vector<16x128xf32>, vector<128x128xf32>, vector<16x128xf32> -> vector<16x128xf32>
    %16 = arith.addf %10, %15 : vector<16x128xf32>
    %c0_17 = arith.constant 0 : index
    %c3 = arith.constant 3 : index
    %c0_18 = arith.constant 0 : index
    %17 = vector.load %arg2[%c0_17, %c3, %c0_18] : memref<1x19x128xf32, #tpu.memory_space<vmem>>, vector<1x16x128xf32>
    %18 = vector.shape_cast %17 : vector<1x16x128xf32> to vector<16x128xf32>
    %c3_19 = arith.constant 3 : index
    %c0_20 = arith.constant 0 : index
    %c0_21 = arith.constant 0 : index
    %19 = vector.load %arg4[%c3_19, %c0_20, %c0_21] : memref<4x128x128xf32, #tpu.memory_space<vmem>>, vector<1x128x128xf32>
    %20 = vector.shape_cast %19 : vector<1x128x128xf32> to vector<128x128xf32>
    %cst_22 = arith.constant dense<0.000000e+00> : vector<16x128xf32>
    %21 = tpu.matmul %18, %20, %cst_22 {dimension_numbers = #tpu.dot_dimension_numbers<[1], [0], [0], [1], [0, 0, 1, 1], [], []>} : vector<16x128xf32>, vector<128x128xf32>, vector<16x128xf32> -> vector<16x128xf32>
    %22 = arith.addf %16, %21 : vector<16x128xf32>
    %c0_23 = arith.constant 0 : index
    %c0_24 = arith.constant 0 : index
    %23 = vector.load %arg7[%c0_23, %c0_24] : memref<1x128xf32, #tpu.memory_space<vmem>>, vector<1x128xf32>
    %24 = vector.broadcast %23 : vector<1x128xf32> to vector<16x128xf32>
    %25 = arith.addf %22, %24 : vector<16x128xf32>
    %c0_25 = arith.constant 0 : index
    %26 = memref.load %arg1[%c0_25] : memref<1xf32, #tpu.memory_space<smem>>
    %cst_26 = arith.constant 0.000000e+00 : f32
    %27 = vector.broadcast %cst_26 : f32 to vector<16x128xf32>
    %28 = arith.cmpf oge, %25, %27 : vector<16x128xf32>
    %29 = vector.broadcast %26 : f32 to vector<16x128xf32>
    %30 = arith.mulf %29, %25 : vector<16x128xf32>
    %31 = arith.select %28, %25, %30 : vector<16x128xi1>, vector<16x128xf32>
    %c0_27 = arith.constant 0 : index
    %c0_28 = arith.constant 0 : index
    %c0_29 = arith.constant 0 : index
    %32 = vector.load %arg3[%c0_27, %c0_28, %c0_29] : memref<1x8x128xf32, #tpu.memory_space<vmem>>, vector<1x8x128xf32>
    %33 = vector.shape_cast %32 : vector<1x8x128xf32> to vector<8x128xf32>
    %c0_30 = arith.constant 0 : index
    %c0_31 = arith.constant 0 : index
    %34 = vector.load %arg5[%c0_30, %c0_31] : memref<128x128xf32, #tpu.memory_space<vmem>>, vector<128x128xf32>
    %cst_32 = arith.constant dense<0.000000e+00> : vector<8x128xf32>
    %35 = tpu.matmul %33, %34, %cst_32 {dimension_numbers = #tpu.dot_dimension_numbers<[1], [0], [0], [1], [0, 0, 1, 1], [], []>} : vector<8x128xf32>, vector<128x128xf32>, vector<8x128xf32> -> vector<8x128xf32>
    %c0_33 = arith.constant 0 : index
    %c0_34 = arith.constant 0 : index
    %36 = vector.load %arg6[%c0_33, %c0_34] : memref<16x8xf32, #tpu.memory_space<vmem>>, vector<16x8xf32>
    %cst_35 = arith.constant dense<0.000000e+00> : vector<16x128xf32>
    %37 = tpu.matmul %36, %35, %cst_35 {dimension_numbers = #tpu.dot_dimension_numbers<[1], [0], [0], [1], [0, 0, 1, 1], [], []>} : vector<16x8xf32>, vector<8x128xf32>, vector<16x128xf32> -> vector<16x128xf32>
    %c0_36 = arith.constant 0 : index
    %c0_37 = arith.constant 0 : index
    %38 = vector.load %arg8[%c0_36, %c0_37] : memref<1x128xf32, #tpu.memory_space<vmem>>, vector<1x128xf32>
    %39 = vector.broadcast %38 : vector<1x128xf32> to vector<16x128xf32>
    %40 = arith.addf %37, %39 : vector<16x128xf32>
    %cst_38 = arith.constant 5.000000e-01 : f32
    %41 = vector.broadcast %cst_38 : f32 to vector<16x128xf32>
    %42 = arith.mulf %41, %31 : vector<16x128xf32>
    %cst_39 = arith.constant 5.000000e-01 : f32
    %43 = vector.broadcast %cst_39 : f32 to vector<16x128xf32>
    %44 = arith.mulf %43, %40 : vector<16x128xf32>
    %45 = arith.addf %42, %44 : vector<16x128xf32>
    %c0_40 = arith.constant 0 : index
    %c0_41 = arith.constant 0 : index
    %c0_42 = arith.constant 0 : index
    %46 = vector.load %arg9[%c0_40, %c0_41, %c0_42] : memref<1x16x128xf32, #tpu.memory_space<vmem>>, vector<1x16x128xf32>
    %47 = vector.shape_cast %46 : vector<1x16x128xf32> to vector<16x128xf32>
    %48 = vector.shape_cast %45 : vector<16x128xf32> to vector<1x16x128xf32>
    tpu.vector_store %arg9[%c0_40, %c0_41, %c0_42], %48 {strides = array<i32>} : memref<1x16x128xf32, #tpu.memory_space<vmem>>, vector<1x16x128xf32>,
    return
  }
  func.func @transform_0(%arg0: i32) -> i32 {
    %c0_i32 = arith.constant 0 : i32
    %c0_i32_0 = arith.constant 0 : i32
    return %c0_i32 : i32
  }
  func.func @transform_1(%arg0: i32) -> (i32, i32, i32) {
    %c0_i32 = arith.constant 0 : i32
    %c0_i32_0 = arith.constant 0 : i32
    %c0_i32_1 = arith.constant 0 : i32
    return %arg0, %c0_i32, %c0_i32_0 : i32, i32, i32
  }
  func.func @transform_2(%arg0: i32) -> (i32, i32, i32) {
    %c0_i32 = arith.constant 0 : i32
    %c0_i32_0 = arith.constant 0 : i32
    %c0_i32_1 = arith.constant 0 : i32
    return %arg0, %c0_i32, %c0_i32_0 : i32, i32, i32
  }
  func.func @transform_3(%arg0: i32) -> (i32, i32, i32) {
    %c0_i32 = arith.constant 0 : i32
    %c0_i32_0 = arith.constant 0 : i32
    %c0_i32_1 = arith.constant 0 : i32
    %c0_i32_2 = arith.constant 0 : i32
    return %c0_i32, %c0_i32_0, %c0_i32_1 : i32, i32, i32
  }
  func.func @transform_4(%arg0: i32) -> (i32, i32) {
    %c0_i32 = arith.constant 0 : i32
    %c0_i32_0 = arith.constant 0 : i32
    %c0_i32_1 = arith.constant 0 : i32
    return %c0_i32, %c0_i32_0 : i32, i32
  }
  func.func @transform_5(%arg0: i32) -> (i32, i32) {
    %c0_i32 = arith.constant 0 : i32
    %c0_i32_0 = arith.constant 0 : i32
    %c0_i32_1 = arith.constant 0 : i32
    return %c0_i32, %c0_i32_0 : i32, i32
  }
  func.func @transform_6(%arg0: i32) -> (i32, i32) {
    %c0_i32 = arith.constant 0 : i32
    %c0_i32_0 = arith.constant 0 : i32
    %c0_i32_1 = arith.constant 0 : i32
    return %c0_i32, %c0_i32_0 : i32, i32
  }
  func.func @transform_7(%arg0: i32) -> (i32, i32) {
    %c0_i32 = arith.constant 0 : i32
    %c0_i32_0 = arith.constant 0 : i32
    %c0_i32_1 = arith.constant 0 : i32
    return %c0_i32, %c0_i32_0 : i32, i32
  }
  func.func @transform_8(%arg0: i32) -> (i32, i32, i32) {
    %c0_i32 = arith.constant 0 : i32
    %c0_i32_0 = arith.constant 0 : i32
    %c0_i32_1 = arith.constant 0 : i32
    return %arg0, %c0_i32, %c0_i32_0 : i32, i32, i32
  }
}

</mosaic_0001>

<bundles_post_ra>
// kernel: tpu_custom_call.1
= control target key start
LH: loop header
LB: loop body
LE: loop exit
PB: predicated region body
PF: predicated region fallthrough
CT: control target
= control target key end

     0   :  { %s1147_s0 = inlined_call_operand.<no memory space> [shape: f32[1], index: 0, kind: input, shape index: {}]   ;;  %s1148_s1 = inlined_call_operand.vmem [shape: f32[2,19,128], index: 1, kind: input, shape index: {}]   ;;  %s1149_s2 = inlined_call_operand.vmem [shape: f32[2,8,128], index: 2, kind: input, shape index: {}]   ;;  %s1150_s3 = inlined_call_operand.hbm [shape: f32[4,128,128], index: 3, kind: input, shape index: {}]   ;;  %s1151_s4 = inlined_call_operand.hbm [shape: f32[128,128], index: 4, kind: input, shape index: {}]   ;;  %s1152_s5 = inlined_call_operand.vmem [shape: f32[16,8], index: 5, kind: input, shape index: {}]   ;;  %s1153_s6 = inlined_call_operand.vmem [shape: f32[1,128], index: 6, kind: input, shape index: {}]   ;;  %s1154_s7 = inlined_call_operand.vmem [shape: f32[1,128], index: 7, kind: input, shape index: {}]   ;;  %s1155_s8 = inlined_call_operand.hbm [shape: f32[2,16,128], index: 8, kind: output, shape index: {}]  }
   0x1   :  { %13 = sst [smem:[#allocation2]] %s1147_s0 }
   0x2   :  { %14 = vsyncpa [#allocation4], 0 }
   0x3   :  { %15 = vsyncpa [#allocation7], 0 }
   0x4   :  { %16 = vsyncpa [#allocation5], 0 }
   0x5   :  { %18 = vsyncpa [#allocation5 + $0x1], 0  ;;  %s1006_s29 = smov 0   ;;  %s1008_s30 = smov 0  }
   0x6   :  { %s1010_s9 = smov 0   ;;  %s1012_s10 = smov 0  }
   0x7 LB: > { %s1027_s0 = sadd.s32 4294967295, %s950_s10   ;;  %s734_s11 = sadd.s32 4294967294, %s950_s10   ;;  %s950_s10 = sphi %s1012_s10, %s1162_s10   ;;  %s946_s9 = sphi %s1010_s9, %s1161_s9   ;;  %s942_s30 = sphi %s1008_s30, %s1160_s30   ;;  %s938_s29 = sphi %s1006_s29, %s1159_s29  }
   0x8   : > { %s1031_s12 = sadd.s32 1, %s950_s10   ;;  %s209_s13 = sadd.s32 1, %s946_s9 }
   0x9   : > { %s206_s14 = ssub.s32 %s950_s10, %s1031_s12  ;;  %p219_p0 = scmp.ne.s32.totalorder %s946_s9, %s942_s30 }
   0xa   : > { %p207_p1 = scmp.eq.s32.totalorder %s206_s14, 0  ;;  %p220_p2 = scmp.eq.s32.totalorder %s1027_s0, 1 }
   0xb   : > { %p225_p3 = scmp.ne.s32.totalorder %s942_s30, %s938_s29  ;;  %p226_p4 = scmp.eq.s32.totalorder %s734_s11, 1 }
   0xc   : > { %s1042_s15 = scalar_select %p207_p1, %s946_s9, %s209_s13  }
   0xd   : > { %p1044_p5 = por %p220_p2, %p219_p0  ;;  %p1048_p6 = por %p226_p4, %p225_p3 }
   0xe   : > { %p735_p7 = scmp.ge.s32.totalorder %s950_s10, 1  ;;  %p233_p8 = scmp.lt.s32.totalorder %s950_s10, 3 }
   0xf   : > { %p775_p9 = scmp.eq.s32.totalorder %s1027_s0, 0  ;;  %s247_s21 = sshll.u32 %s1150_s3, 4  ;;  %s248_s21 = int_to_ptr.hbm [resolvable:$true] %s247_s21 }
  0x10   : > { %p1055_p10 = pnand %p735_p7, %p233_p8  ;;  %s952_s22 = smov [#allocation3]  }
  0x11   : > { %s249_s23 = sshll.u32 %s952_s22, 4  ;;  %s261_s26 = sshll.u32 %s1151_s4, 4  ;;  %s250_s23 = int_to_ptr.vmem [resolvable:$true] %s249_s23  ;;  %s262_s26 = int_to_ptr.hbm [resolvable:$true] %s261_s26 }
  0x12   : > { %p764_p11 = pneg %p1055_p10  ;;  %s953_s27 = smov 128  }
  0x13   : > { %s954_s28 = smov 8   ;;  %s955_s11 = smov [#allocation6]  }
  0x14   : > { %p765_p12 = pnand %p775_p9, %p764_p11  ;;  %s263_s13 = sshll.u32 %s955_s11, 4  ;;  %s264_s13 = int_to_ptr.vmem [resolvable:$true] %s263_s13 }
  0x15   : > { %303 = sbr.rel (%p1055_p10) target bundleno = 364 (0x16c), region = 52 }
  0x16   : > { %767 = dma.hbm_to_vmem [thread:$0]  (!%p765_p12), %s248_s21, 8192, %s250_s23, [#allocation4], %s953_s27, %s953_s27, %s954_s28  }
  0x17   : > { %770 = dma.hbm_to_vmem [thread:$0]  (!%p765_p12), %s262_s26, 2048, %s264_s13, [#allocation7], %s953_s27, %s953_s27, %s954_s28  }
  0x1a   : > { %925 = dma.done.wait (%p775_p9), [#allocation4], 8192  }
  0x1b   : > { %927 = vsyncadd (%p775_p9), [#allocation4], 4294959104 }
  0x1c   : > { %929 = dma.done.wait (%p775_p9), [#allocation7], 2048  }
  0x1d   : > { %931 = vsyncadd (%p775_p9), [#allocation7], 4294965248  ;;  %v392_v0 = vld [vmem:[#allocation3 + $0xf8] sm:$0xff]  ;;  %v391_v1 = vld [vmem:[#allocation3 + $0xf0] sm:$0xff]  ;;  %p347_p13 = scmp.lt.s32.totalorder %s1027_s0, 1  ;;  %vm584_vm0 = vcmask 64512  }
  0x1e   : > { %393 = vmatpush.msra.mxu0 %v392_v0  ;;  %v457_v2 = vld [vmem:[#allocation3 + $0x178] sm:$0xff]  ;;  %v390_v3 = vld [vmem:[#allocation3 + $0xe8] sm:$0xff]  ;;  %v456_v4 = vld [vmem:[#allocation3 + $0x170] sm:$0xff]  ;;  %s533_s13 = sld [smem:[#allocation2]]  ;;  %s752_s23 = sshll.u32 %s1027_s0, 4 }
  0x1f   : > { %458 = vmatpush.msra.mxu2 %v457_v2  ;;  %v501_v5 = vld [vmem:[#allocation3 + $0x1f8] sm:$0xff]  ;;  %v455_v7 = vld [vmem:[#allocation3 + $0x168] sm:$0xff]  ;;  %v389_v8 = vld [vmem:[#allocation3 + $0xe0] sm:$0xff]  ;;  %s1083_s14 = scalar_select %p347_p13, %s1027_s0, 1 }
  0x20   : > { %394 = vmatpush.msra.mxu0 %v391_v1  ;;  %502 = vmatpush.msra.mxu3 %v501_v5  ;;  %v373_v6 = vld [vmem:[#allocation3 + $0x78] sm:$0xff]  ;;  %v500_v9 = vld [vmem:[#allocation3 + $0x1f0] sm:$0xff]  ;;  %v454_v11 = vld [vmem:[#allocation3 + $0x160] sm:$0xff]  ;;  %s634_s26 = scalar_lea.hbm %s1155_s8, %s752_s23  ;;  %s900_s20 = scalar_lea.hbm %s1155_s8, 32 }
  0x21   : > { %459 = vmatpush.msra.mxu2 %v456_v4  ;;  %416 = vmatpush.msra.mxu1 %v373_v6  ;;  %v372_v10 = vld [vmem:[#allocation3 + $0x70] sm:$0xff]  ;;  %v499_v12 = vld [vmem:[#allocation3 + $0x1e8] sm:$0xff]  ;;  %v388_v13 = vld [vmem:[#allocation3 + $0xd8] sm:$0xff]  ;;  %s753_s18 = smul.u32 24, %s1083_s14  ;;  %s744_s22 = sshll.u32 %s1083_s14, 3 }
  0x22   : > { %395 = vmatpush.msra.mxu0 %v390_v3  ;;  %503 = vmatpush.msra.mxu3 %v500_v9  ;;  %v371_v14 = vld [vmem:[#allocation3 + $0x68] sm:$0xff]  ;;  %v498_v15 = vld [vmem:[#allocation3 + $0x1e0] sm:$0xff]  ;;  %v453_v16 = vld [vmem:[#allocation3 + $0x158] sm:$0xff]  ;;  %s355_s25 = scalar_lea.vmem %s1149_s2, %s744_s22  ;;  %s637_s11 = sshll.u32 %s634_s26, 4  ;;  %s638_s11 = int_to_ptr.hbm [resolvable:$true] %s637_s11 }
  0x23   : > { %460 = vmatpush.msra.mxu2 %v455_v7  ;;  %417 = vmatpush.msra.mxu1 %v372_v10  ;;  %v370_v17 = vld [vmem:[#allocation3 + $0x60] sm:$0xff]  ;;  %v387_v18 = vld [vmem:[#allocation3 + $0xd0] sm:$0xff]  ;;  %v497_v19 = vld [vmem:[#allocation3 + $0x1d8] sm:$0xff]  ;;  %s1089_s21 = scalar_lea.vmem %s1148_s1, %s753_s18 }
  0x24   : > { %396 = vmatpush.msra.mxu0 %v389_v8  ;;  %504 = vmatpush.msra.mxu3 %v499_v12  ;;  %v452_v20 = vld [vmem:[#allocation3 + $0x150] sm:$0xff]  ;;  %v369_v21 = vld [vmem:[#allocation3 + $0x58] sm:$0xff]  ;;  %v386_v22 = vld [vmem:[#allocation3 + $0xc8] sm:$0xff] }
  0x25   : > { %461 = vmatpush.msra.mxu2 %v454_v11  ;;  %418 = vmatpush.msra.mxu1 %v371_v14  ;;  %v496_v23 = vld [vmem:[#allocation3 + $0x1d0] sm:$0xff]  ;;  %v451_v24 = vld [vmem:[#allocation3 + $0x148] sm:$0xff]  ;;  %v385_v26 = vld [vmem:[#allocation3 + $0xc0] sm:$0xff] }
  0x26   : > { %397 = vmatpush.msra.mxu0 %v388_v13  ;;  %505 = vmatpush.msra.mxu3 %v498_v15  ;;  %v368_v25 = vld [vmem:[#allocation3 + $0x50] sm:$0xff]  ;;  %v495_v27 = vld [vmem:[#allocation3 + $0x1c8] sm:$0xff]  ;;  %v450_v28 = vld [vmem:[#allocation3 + $0x140] sm:$0xff] }
  0x27   : > { %462 = vmatpush.msra.mxu2 %v453_v16  ;;  %419 = vmatpush.msra.mxu1 %v370_v17  ;;  %v367_v29 = vld [vmem:[#allocation3 + $0x48] sm:$0xff]  ;;  %v384_v30 = vld [vmem:[#allocation3 + $0xb8] sm:$0xff]  ;;  %v494_v31 = vld [vmem:[#allocation3 + $0x1c0] sm:$0xff] }
  0x28   : > { %398 = vmatpush.msra.mxu0 %v387_v18  ;;  %506 = vmatpush.msra.mxu3 %v497_v19  ;;  %v449_v32 = vld [vmem:[#allocation3 + $0x138] sm:$0xff]  ;;  %v366_v33 = vld [vmem:[#allocation3 + $0x40] sm:$0xff]  ;;  %v383_v34 = vld [vmem:[#allocation3 + $0xb0] sm:$0xff] }
  0x29   : > { %463 = vmatpush.msra.mxu2 %v452_v20  ;;  %420 = vmatpush.msra.mxu1 %v369_v21  ;;  %v493_v35 = vld [vmem:[#allocation3 + $0x1b8] sm:$0xff]  ;;  %v448_v36 = vld [vmem:[#allocation3 + $0x130] sm:$0xff]  ;;  %v382_v38 = vld [vmem:[#allocation3 + $0xa8] sm:$0xff] }
  0x2a   : > { %399 = vmatpush.msra.mxu0 %v386_v22  ;;  %507 = vmatpush.msra.mxu3 %v496_v23  ;;  %v365_v37 = vld [vmem:[#allocation3 + $0x38] sm:$0xff]  ;;  %v492_v39 = vld [vmem:[#allocation3 + $0x1b0] sm:$0xff]  ;;  %v447_v40 = vld [vmem:[#allocation3 + $0x128] sm:$0xff] }
  0x2b   : > { %464 = vmatpush.msra.mxu2 %v451_v24  ;;  %421 = vmatpush.msra.mxu1 %v368_v25  ;;  %v364_v41 = vld [vmem:[#allocation3 + $0x30] sm:$0xff]  ;;  %v381_v42 = vld [vmem:[#allocation3 + $0xa0] sm:$0xff]  ;;  %v491_v43 = vld [vmem:[#allocation3 + $0x1a8] sm:$0xff] }
  0x2c   : > { %400 = vmatpush.msra.mxu0 %v385_v26  ;;  %508 = vmatpush.msra.mxu3 %v495_v27  ;;  %v446_v44 = vld [vmem:[#allocation3 + $0x120] sm:$0xff]  ;;  %v363_v45 = vld [vmem:[#allocation3 + $0x28] sm:$0xff]  ;;  %v380_v46 = vld [vmem:[#allocation3 + $0x98] sm:$0xff] }
  0x2d   : > { %465 = vmatpush.msra.mxu2 %v450_v28  ;;  %422 = vmatpush.msra.mxu1 %v367_v29  ;;  %v490_v47 = vld [vmem:[#allocation3 + $0x1a0] sm:$0xff]  ;;  %v445_v48 = vld [vmem:[#allocation3 + $0x118] sm:$0xff]  ;;  %v379_v50 = vld [vmem:[#allocation3 + $0x90] sm:$0xff] }
  0x2e   : > { %401 = vmatpush.msra.mxu0 %v384_v30  ;;  %509 = vmatpush.msra.mxu3 %v494_v31  ;;  %v362_v49 = vld [vmem:[#allocation3 + $0x20] sm:$0xff]  ;;  %v489_v51 = vld [vmem:[#allocation3 + $0x198] sm:$0xff]  ;;  %v444_v52 = vld [vmem:[#allocation3 + $0x110] sm:$0xff] }
  0x2f   : > { %466 = vmatpush.msra.mxu2 %v449_v32  ;;  %423 = vmatpush.msra.mxu1 %v366_v33  ;;  %v361_v53 = vld [vmem:[#allocation3 + $0x18] sm:$0xff]  ;;  %v378_v54 = vld [vmem:[#allocation3 + $0x88] sm:$0xff]  ;;  %v488_v55 = vld [vmem:[#allocation3 + $0x190] sm:$0xff] }
  0x30   : > { %402 = vmatpush.msra.mxu0 %v383_v34  ;;  %510 = vmatpush.msra.mxu3 %v493_v35  ;;  %v443_v56 = vld [vmem:[#allocation3 + $0x108] sm:$0xff]  ;;  %v360_v57 = vld [vmem:[#allocation3 + $0x10] sm:$0xff]  ;;  %v377_v58 = vld [vmem:[#allocation3 + $0x80] sm:$0xff] }
  0x31   : > { %467 = vmatpush.msra.mxu2 %v448_v36  ;;  %424 = vmatpush.msra.mxu1 %v365_v37  ;;  %v557_v59 = vld [vmem:[#allocation6 + $0x78] sm:$0xff]  ;;  %v487_v60 = vld [vmem:[#allocation3 + $0x188] sm:$0xff]  ;;  %v442_v61 = vld [vmem:[#allocation3 + $0x100] sm:$0xff] }
  0x32   : > { %403 = vmatpush.msra.mxu0 %v382_v38  ;;  %511 = vmatpush.msra.mxu3 %v492_v39  ;;  %v439_v62 = vld [vmem:[%s1089_s21 + $0x2] sm:$0xff]  ;;  %v556_v0 = vld [vmem:[#allocation6 + $0x70] sm:$0xff]  ;;  %v553_v8 = vld [vmem:[#allocation6 + $0x58] sm:$0xff] }
  0x33   : > { %468 = vmatpush.msra.mxu2 %v447_v40  ;;  %425 = vmatpush.msra.mxu1 %v364_v41  ;;  %v359_v63 = vld [vmem:[#allocation3 + $0x8] sm:$0xff]  ;;  %v486_v1 = vld [vmem:[#allocation3 + $0x180] sm:$0xff]  ;;  %v552_v10 = vld [vmem:[#allocation6 + $0x50] sm:$0xff] }
  0x34   : > { %404 = vmatpush.msra.mxu0 %v381_v42  ;;  %512 = vmatpush.msra.mxu3 %v491_v43  ;;  %v483_v2 = vld [vmem:[%s1089_s21 + $0x3] sm:$0xff]  ;;  %v484_v11 = vld [vmem:[%s1089_s21 + $0xb] sm:$0xff]  ;;  %v549_v16 = vld [vmem:[#allocation6 + $0x38] sm:$0xff]  ;;  %v536_v42 = vstv %s533_s13  ;;  %s894_s13 = sshra.s32 %s638_s11, 4  ;;  %s895_s13 = int_to_ptr.hbm [resolvable:$true] %s894_s13 }
  0x35   : > { %469 = vmatpush.msra.mxu2 %v446_v44  ;;  %426 = vmatpush.msra.mxu1 %v363_v45  ;;  %v358_v3 = vld [vmem:[#allocation3] sm:$0xff]  ;;  %v555_v4 = vld [vmem:[#allocation6 + $0x68] sm:$0xff]  ;;  %v548_v17 = vld [vmem:[#allocation6 + $0x30] sm:$0xff]  ;;  %s896_s14 = scalar_lea.hbm %s895_s13, 16  ;;  %p901_p3 = scmp.lt.s32.totalorder %s895_s13, %s1155_s8 }
  0x36   : > { %405 = vmatpush.msra.mxu0 %v380_v46  ;;  %513 = vmatpush.msra.mxu3 %v490_v47  ;;  %v356_v5 = vld [vmem:[%s1089_s21] sm:$0xff]  ;;  %v440_v9 = vld [vmem:[%s1089_s21 + $0xa] sm:$0xff]  ;;  %v545_v20 = vld [vmem:[#allocation6 + $0x18] sm:$0xff]  ;;  %p897_p0 = scmp.ne.s32.totalorder %s895_s13, %s896_s14  ;;  %p902_p4 = scmp.lt.s32.totalorder %s900_s20, %s896_s14 }
  0x37   : > { %470 = vmatpush.msra.mxu2 %v445_v48  ;;  %427 = vmatpush.msra.mxu1 %v362_v49  ;;  %v374_v6 = vld [vmem:[%s1089_s21 + $0x1] sm:$0xff]  ;;  %v375_v14 = vld [vmem:[%s1089_s21 + $0x9] sm:$0xff]  ;;  %v818_v37 = vld [vmem:[%s1153_s6] ss:$0 sm:$0xff] }
  0x38   : > { %406 = vmatpush.msra.mxu0 %v379_v50  ;;  %514 = vmatpush.msra.mxu3 %v489_v51  ;;  %v554_v7 = vld [vmem:[#allocation6 + $0x60] sm:$0xff]  ;;  %v551_v12 = vld [vmem:[#allocation6 + $0x48] sm:$0xff]  ;;  %v544_v21 = vld [vmem:[#allocation6 + $0x10] sm:$0xff]  ;;  %p898_p1 = pnand %p897_p0, %p1044_p5  ;;  %p903_p7 = por %p902_p4, %p901_p3 }
  0x39   : > { %471 = vmatpush.msra.mxu2 %v444_v52  ;;  %428 = vmatpush.msra.mxu1 %v361_v53  ;;  %v357_v13 = vld [vmem:[%s1089_s21 + $0x8] sm:$0xff]  ;;  %v550_v15 = vld [vmem:[#allocation6 + $0x40] sm:$0xff]  ;;  %s344_s21 = sand.u32 1, %s942_s30  }
  0x3a   : > { %407 = vmatpush.msra.mxu0 %v378_v54  ;;  %515 = vmatpush.msra.mxu3 %v488_v55  ;;  %v547_v18 = vld [vmem:[#allocation6 + $0x28] sm:$0xff]  ;;  %v546_v19 = vld [vmem:[#allocation6 + $0x20] sm:$0xff]  ;;  %s742_s22 = sshll.u32 %s344_s21, 4  ;;  %s623_s0 = scalar_lea.sflag [#allocation5], %s344_s21 }
  0x3b   : > { %472 = vmatpush.msra.mxu2 %v443_v56  ;;  %429 = vmatpush.msra.mxu1 %v360_v57  ;;  %v543_v22 = vld [vmem:[#allocation6 + $0x8] sm:$0xff]  ;;  %v542_v23 = vld [vmem:[#allocation6] sm:$0xff]  ;;  %s346_s27 = scalar_lea.vmem [#allocation8], %s742_s22  ;;  %p899_p2 = pneg %p898_p1 }
  0x3c   : > { %408 = vmatpush.msra.mxu0 %v377_v58  ;;  %516 = vmatpush.msra.mxu3 %v487_v60  ;;  %v541_v24 = vld [vmem:[%s355_s25] sm:$0xff]  ;;  %v579_v29 = vld [vmem:[%s1152_s5 + $0x8] sm:$0xff]  ;;  %s635_s28 = sshll.u32 %s346_s27, 4  ;;  %s636_s28 = int_to_ptr.vmem [resolvable:$true] %s635_s28 }
  0x3d   : > { %473 = vmatpush.msra.mxu2 %v442_v61  ;;  %430 = vmatpush.msra.mxu1 %v359_v63  ;;  %v578_v27 = vld [vmem:[%s1152_s5] sm:$0xff]  ;;  %p904_p8 = pnand %p903_p7, %p899_p2 }
  0x3e   : > { %558 = vmatpush.msrb.mxu0 %v557_v59  ;;  %474 = vmatmul.f32.vlgmr.msra.gmra.mxu2 %v439_v62  ;;  %v819_v46 = vld [vmem:[%s1154_s7] ss:$0 sm:$0xff] }
  0x3f   : > { %517 = vmatpush.msra.mxu3 %v486_v1  ;;  %431 = vmatpush.msra.mxu1 %v358_v3 }
  0x40   : > { %559 = vmatpush.msrb.mxu0 %v556_v0  ;;  %518 = vmatmul.f32.vlgmr.msra.gmra.mxu3 %v483_v2 }
  0x41   : > { %432 = vmatmul.f32.vlgmr.msra.gmra.mxu1 %v356_v5  ;;  %409 = vmatmul.f32.vlgmr.msra.gmra.mxu0 %v374_v6 }
  0x42   : > { %560 = vmatpush.msrb.mxu0 %v555_v4 }
  0x44   : > { %561 = vmatpush.msrb.mxu0 %v554_v7 }
  0x46   : > { %562 = vmatpush.msrb.mxu0 %v553_v8  ;;  %477 = vmatmul.f32.gmra.mxu2 %v440_v9 }
  0x48   : > { %563 = vmatpush.msrb.mxu0 %v552_v10  ;;  %521 = vmatmul.f32.gmra.mxu3 %v484_v11 }
  0x49   : > { %435 = vmatmul.f32.gmra.mxu1 %v357_v13  ;;  %412 = vmatmul.f32.gmra.mxu0 %v375_v14 }
  0x4a   : > { %564 = vmatpush.msrb.mxu0 %v551_v12 }
  0x4c   : > { %565 = vmatpush.msrb.mxu0 %v550_v15 }
  0x4e   : > { %566 = vmatpush.msrb.mxu0 %v549_v16 }
  0x50   : > { %567 = vmatpush.msrb.mxu0 %v548_v17 }
  0x52   : > { %568 = vmatpush.msrb.mxu0 %v547_v18 }
  0x54   : > { %569 = vmatpush.msrb.mxu0 %v546_v19 }
  0x56   : > { %570 = vmatpush.msrb.mxu0 %v545_v20 }
  0x58   : > { %571 = vmatpush.msrb.mxu0 %v544_v21 }
  0x5a   : > { %572 = vmatpush.msrb.mxu0 %v543_v22 }
  0x5c   : > { %573 = vmatpush.msrb.mxu0 %v542_v23 }
  0x5d   : > { %574 = vmatmul.f32.vlgmr.msrb.gmra.mxu0 %v541_v24 }
  0xbe   : > { %v410_v25 = vpop.f32.mrf.mxu0  ;;  %v433_v30 = vpop.f32.mrf.mxu1 }
  0xbf   : > { %v434_v32 = vadd.f32 %v433_v30, %v410_v25 }
  0xc1   : > { %v475_v31 = vpop.f32.mrf.mxu2 }
  0xc2   : > { %v481_v34 = vadd.f32 %v475_v31, %v434_v32 }
  0xc3   : > { %v519_v33 = vpop.f32.mrf.mxu3 }
  0xc4   : > { %v525_v36 = vadd.f32 %v519_v33, %v481_v34 }
  0xc6   : > { %v413_v26 = vpop.f32.mrf.mxu0  ;;  %v436_v35 = vpop.f32.mrf.mxu1  ;;  %v531_v40 = vadd.f32 %v818_v37, %v525_v36 }
  0xc7   : > { %v437_v38 = vadd.f32 %v436_v35, %v413_v26 }
  0xc8   : > { %v537_v44 = vmul.f32 %v536_v42, %v531_v40  ;;  %vm534_vm1 = vcmp.ge.f32.partialorder %v531_v40, 0.0 }
  0xc9   : > { %v478_v39 = vpop.f32.mrf.mxu2 }
  0xca   : > { %v482_v41 = vadd.f32 %v478_v39, %v437_v38  ;;  %v539_v48 = vsel %vm534_vm1, %v531_v40, %v537_v44 }
  0xcb   : > { %v522_v43 = vpop.f32.mrf.mxu3  ;;  %v614_v51 = vmul.f32 0.5, %v539_v48 }
  0xcc   : > { %v526_v45 = vadd.f32 %v522_v43, %v482_v41 }
  0xce   : > { %v532_v47 = vadd.f32 %v818_v37, %v526_v45 }
  0xd0   : > { %v538_v53 = vmul.f32 %v536_v42, %v532_v47  ;;  %vm535_vm2 = vcmp.ge.f32.partialorder %v532_v47, 0.0 }
  0xd2   : > { %v540_v55 = vsel %vm535_vm2, %v532_v47, %v538_v53 }
  0xd3   : > { %v615_v58 = vmul.f32 0.5, %v540_v55 }
  0xda   : > { %v575_v28 = vpop.f32.mrf.mxu0 }
  0xdb   : > { %606 = vmatpush.msrb.mxu1 %v575_v28 }
  0xdc   : > { %745 = vmatmul.msk.f32.vlgmr.msrb.gmra.mxu1 %vm584_vm0, %v578_v27 }
  0xe4   : > { %746 = vmatmul.msk.f32.gmra.mxu1 %vm584_vm0, %v579_v29 }
 0x159   : > { %v608_v49 = vpop.f32.mrf.mxu1 }
 0x15a   : > { %v609_v50 = vadd.f32 %v819_v46, %v608_v49 }
 0x15c   : > { %v616_v52 = vmul.f32 0.5, %v609_v50 }
 0x15e   : > { %v618_v54 = vadd.f32 %v616_v52, %v614_v51 }
 0x160   : > { %620 = vst [vmem:[%s346_s27] sm:$0xff] %v618_v54 }
 0x161   : > { %v611_v56 = vpop.f32.mrf.mxu1 }
 0x162   : > { %v612_v57 = vadd.f32 %v819_v46, %v611_v56 }
 0x164   : > { %v617_v59 = vmul.f32 0.5, %v612_v57 }
 0x166   : > { %v619_v60 = vadd.f32 %v617_v59, %v615_v58 }
 0x168   : > { %621 = vst [vmem:[%s346_s27 + $0x8] sm:$0xff] %v619_v60 }
 0x169   : > { %907 = shalt.err (!%p904_p8)
}
 0x16a   : > { %s956_s21 = smov 128   ;;  %s957_s24 = smov 8  }
 0x16b   : > { %762 = dma.vmem_to_hbm [thread:$0]  (%p1044_p5), %s636_s28, 256, %s638_s11, %s623_s0, %s956_s21, %s956_s21, %s957_s24  }
 0x16c PF: > { %p779_p9 = scmp.ge.s32.totalorder %s950_s10, 2  ;;  %s652_s25 = sand.u32 1, %s938_s29  }
 0x16d   : > { %s653_s26 = scalar_lea.sflag [#allocation5], %s652_s25 }
 0x16e   : > { %p772_p10 = pnand %p779_p9, %p1048_p6 }
 0x170   : > { %p773_p11 = pneg %p772_p10 }
 0x172   : > { %933 = dma.done.wait (%p773_p11), %s653_s26, 256  }
 0x173   : > { %935 = vsyncadd (%p773_p11), %s653_s26, 4294967040  ;;  %p21_p12 = scmp.ge.s32.totalorder %s1031_s12, 4   ;;  %s1159_s29 = smov %s942_s30 }
 0x174   : > { %s1160_s30 = smov %s946_s9  ;;  %s1161_s9 = smov %s1042_s15 }
 0x175   : > { %s1162_s10 = smov %s1031_s12  ;;  %23 = sbr.rel (!%p21_p12) target bundleno = 7 (0x7), region = 102 }
 0x17a   :  { %659 = vsyncpa [#allocation4], 1 }
 0x17b   :  { %661 = vsyncpa [#allocation4 + $0x1], 1 }
 0x17c   :  { %662 = vsyncpa [#allocation7], 1 }
 0x17d   :  { %663 = vsyncpa [#allocation5], 1 }
 0x17e   :  { %665 = vsyncpa [#allocation5 + $0x1], 1 }

</bundles_post_ra>
